<compile_context>
chip_gen: v7x
topology: tpu7x:2x2x1
jax: 0.10.0
libtpu: 0.0.40
codegen_flags: <defaults>
</compile_context>

<pallas_src>
import jax
import jax.numpy as jnp
from jax import lax
from jax.experimental import pallas as pl
from jax.experimental.pallas import tpu as pltpu


def _round_up(x, m):
    return ((x + m - 1) // m) * m


def _vmem_limit_bytes():
    # Leave headroom for double-buffered input/output blocks.
    try:
        cap = int(pltpu.get_tpu_info().vmem_capacity_bytes)
    except Exception:
        cap = 64 * 1024 * 1024
    return int(min(cap * 3 // 4, 100 * 1024 * 1024))


# ----------------------------------------------------------------------------
# Fused kernel: conv1+BN1+LReLU -> conv2+BN2 -> +identity -> LReLU
# ----------------------------------------------------------------------------
def _make_kernel(off1, off2, id_off, lh, l1p):
    def kernel(x_ref, w1_ref, s1_ref, b1_ref, w2_ref, s2_ref, b2_ref,
               m_ref, o_ref):
        # x_ref : (1, Cp, Ltot) bf16  zero-haloed, flattened padded frame
        # w*_ref: (9, Cp, Cp)   bf16  per-tap conv weights
        # s*/b* : (Cp, 1)       f32   folded BN scale / shift
        # m_ref : (1, Lh)       f32   1.0 on interior padded-frame positions
        # o_ref : (1, Cp, L1p)        lane-aligned output
        xv = x_ref[0]                                            # (Cp, Ltot)

        # ---- conv1: 9 accumulated MXU matmuls (no im2col buffer) ----------
        acc = jnp.dot(w1_ref[0], xv[:, off1[0]:off1[0] + lh],
                      preferred_element_type=jnp.float32)
        for t in range(1, 9):
            acc += jnp.dot(w1_ref[t], xv[:, off1[t]:off1[t] + lh],
                           preferred_element_type=jnp.float32)
        h1 = acc * s1_ref[...] + b1_ref[...]                     # BN1 (f32)
        h1 = jnp.maximum(h1, 0.2 * h1)                           # LeakyReLU
        # Zero the halo / wrap columns: h1 now equals conv1's output
        # zero-padded by 1 pixel, laid out in the flattened padded frame.
        h1 = (h1 * m_ref[...]).astype(jnp.bfloat16)              # (Cp, Lh)

        # ---- conv2: 9 accumulated MXU matmuls ------------------------------
        acc = jnp.dot(w2_ref[0], h1[:, off2[0]:off2[0] + l1p],
                      preferred_element_type=jnp.float32)
        for t in range(1, 9):
            acc += jnp.dot(w2_ref[t], h1[:, off2[t]:off2[t] + l1p],
                           preferred_element_type=jnp.float32)
        y = acc * s2_ref[...] + b2_ref[...]                      # BN2 (f32)

        # ---- residual add (downsample=None -> identity) + LeakyReLU -------
        y = y + xv[:, id_off:id_off + l1p].astype(jnp.float32)
        y = jnp.maximum(y, 0.2 * y)
        o_ref[0] = y.astype(o_ref.dtype)

    return kernel


# ----------------------------------------------------------------------------
# Host-side packing helpers (pure layout work, stays in plain JAX)
# ----------------------------------------------------------------------------
def _pack_weight(w_oihw, cp):
    """OIHW (c,c,3,3) -> (9, cp, cp) bf16, tap-major (kh,kw) row-major."""
    o, i, _, _ = w_oihw.shape
    w = jnp.pad(w_oihw, ((0, cp - o), (0, cp - i), (0, 0), (0, 0)))
    return jnp.transpose(w, (2, 3, 0, 1)).reshape(9, cp, cp).astype(jnp.bfloat16)


def _pad_col(v, cp):
    return jnp.pad(v, (0, cp - v.shape[0])).reshape(cp, 1).astype(jnp.float32)


# ----------------------------------------------------------------------------
# BasicBlock forward (NCHW in / NCHW out, matching the PyTorch module)
# ----------------------------------------------------------------------------
def basic_block_forward(x_nchw, params, unpad=True):
    n, c, h, w = x_nchw.shape
    cp = _round_up(c, 16)            # bf16 sublane packing -> multiple of 16
    wp = w + 2                       # padded-frame row length == tap row stride
    l1 = h * wp                      # flattened output length (wrap cols incl.)
    l1p = _round_up(l1, 128)         # lane-aligned output width (unmasked vst)
    lh = l1p + 2 * wp + 2            # conv1-output frame covering conv2 reads
    ltot_rows = -(-(l1p + 5 * wp + 3) // wp)
    ltot = ltot_rows * wp
    id_off = 3 * wp + 1              # flat offset of image pixel (0,0) in xbuf

    # ONE pad builds the whole haloed flat frame: channel pad to cp, 3 zero rows
    # on top (= margin so all tap slices have non-negative static starts),
    # bottom fill rows, (1,1) column pad; reshape (rows, wp) -> flat is free.
    xbuf = jnp.pad(
        x_nchw.astype(jnp.bfloat16),
        ((0, 0), (0, cp - c), (3, ltot_rows - h - 3), (1, 1)),
    ).reshape(n, cp, ltot)

    # Tap offsets (static): conv1 reads xbuf, conv2 reads h1 (padded-frame coords).
    off1 = tuple((wp - 1) + kh * wp + kw for kh in range(3) for kw in range(3))
    off2 = tuple(kh * wp + kw for kh in range(3) for kw in range(3))

    # Interior mask of the conv1-output padded frame.
    j = jnp.arange(lh)
    yy, xx = j // wp, j % wp
    mask = ((yy >= 1) & (yy <= h) & (xx >= 1) & (xx <= w))
    mask = mask.astype(jnp.float32).reshape(1, lh)

    w1p = _pack_weight(params["w1"], cp)
    w2p = _pack_weight(params["w2"], cp)
    s1 = _pad_col(params["scale1"], cp)
    b1 = _pad_col(params["shift1"], cp)
    s2 = _pad_col(params["scale2"], cp)
    b2 = _pad_col(params["shift2"], cp)

    kernel = _make_kernel(off1, off2, id_off, lh, l1p)
    out = pl.pallas_call(
        kernel,
        out_shape=jax.ShapeDtypeStruct((n, cp, l1p), x_nchw.dtype),
        grid=(n,),
        in_specs=[
            pl.BlockSpec((1, cp, ltot), lambda b: (b, 0, 0)),
            pl.BlockSpec((9, cp, cp), lambda b: (0, 0, 0)),
            pl.BlockSpec((cp, 1), lambda b: (0, 0)),
            pl.BlockSpec((cp, 1), lambda b: (0, 0)),
            pl.BlockSpec((9, cp, cp), lambda b: (0, 0, 0)),
            pl.BlockSpec((cp, 1), lambda b: (0, 0)),
            pl.BlockSpec((cp, 1), lambda b: (0, 0)),
            pl.BlockSpec((1, lh), lambda b: (0, 0)),
        ],
        out_specs=pl.BlockSpec((1, cp, l1p), lambda b: (b, 0, 0)),
        compiler_params=pltpu.CompilerParams(
            dimension_semantics=("parallel",),
            vmem_limit_bytes=_vmem_limit_bytes()),
    )(xbuf, w1p, s1, b1, w2p, s2, b2, mask)

    if not unpad:
        # Raw kernel layout (N, Cp, L1p): junk in pad channels / wrap columns.
        # Lets a fused consumer skip the extra HBM round trip of the slice below.
        return out
    return out[:, :c, :l1].reshape(n, c, h, wp)[:, :, :, :w]


# ----------------------------------------------------------------------------
# Pure-JAX reference with the SAME precision policy (bf16 conv operands,
# f32 accumulation / BN / activations) for a tight correctness check.
# ----------------------------------------------------------------------------
def _ref_forward(x, params):
    bf = jnp.bfloat16

    def conv(v, wgt):
        return lax.conv_general_dilated(
            v.astype(bf), wgt.astype(bf), window_strides=(1, 1),
            padding=((1, 1), (1, 1)),
            dimension_numbers=("NCHW", "OIHW", "NCHW"),
            preferred_element_type=jnp.float32)

    def lrelu(v):
        return jnp.where(v > 0, v, 0.2 * v)

    y = conv(x, params["w1"])
    y = y * params["scale1"][None, :, None, None] + params["shift1"][None, :, None, None]
    y = lrelu(y)
    z = conv(y, params["w2"])
    z = z * params["scale2"][None, :, None, None] + params["shift2"][None, :, None, None]
    return lrelu(z + x.astype(bf).astype(jnp.float32))


# ----------------------------------------------------------------------------
# Deterministic parameter construction (synthetic, no checkpoint)
# ----------------------------------------------------------------------------
def make_params(key, c):
    ks = jax.random.split(key, 10)
    eps = 1e-5
    w1 = 0.25 * jax.random.normal(ks[0], (c, c, 3, 3), jnp.float32)  # OIHW
    w2 = 0.25 * jax.random.normal(ks[1], (c, c, 3, 3), jnp.float32)
    g1 = 1.0 + 0.05 * jax.random.normal(ks[2], (c,), jnp.float32)
    be1 = 0.05 * jax.random.normal(ks[3], (c,), jnp.float32)
    m1 = 0.02 * jax.random.normal(ks[4], (c,), jnp.float32)
    v1 = 1.0 + 0.1 * jax.random.uniform(ks[5], (c,), jnp.float32)
    g2 = 1.0 + 0.05 * jax.random.normal(ks[6], (c,), jnp.float32)
    be2 = 0.05 * jax.random.normal(ks[7], (c,), jnp.float32)
    m2 = 0.02 * jax.random.normal(ks[8], (c,), jnp.float32)
    v2 = 1.0 + 0.1 * jax.random.uniform(ks[9], (c,), jnp.float32)
    s1 = g1 / jnp.sqrt(v1 + eps)
    s2 = g2 / jnp.sqrt(v2 + eps)
    return {
        "w1": w1, "scale1": s1, "shift1": be1 - m1 * s1,
        "w2": w2, "scale2": s2, "shift2": be2 - m2 * s2,
    }


if __name__ == "__main__":
    key = jax.random.PRNGKey(0)
    fwd = jax.jit(basic_block_forward)

    # downsample=None (default) requires inplanes == planes for the residual.
    # Primary small config + a non-square / wider-channel config.
    for (n, c, hh, ww) in [(2, 4, 16, 16), (1, 32, 12, 20)]:
        k_x, k_p, key = jax.random.split(key, 3)
        x = jax.random.normal(k_x, (n, c, hh, ww), jnp.float32)   # NCHW
        params = make_params(k_p, c)

        out = jax.block_until_ready(fwd(x, params))
        assert out.shape == (n, c, hh, ww), out.shape

        ref = jax.block_until_ready(_ref_forward(x, params))
        max_err = float(jnp.max(jnp.abs(out - ref)))
        assert jnp.allclose(out, ref, atol=2e-2, rtol=2e-2), (n, c, hh, ww, max_err)

    print("KERNEL_OK")
</pallas_src>

<mosaic_0001>
module attributes {stable_mosaic.version = 11 : i64} {
  func.func @kernel(%arg0: i32, %arg1: memref<1x16x486xbf16, #tpu.memory_space<vmem>>, %arg2: memref<9x16x16xbf16, #tpu.memory_space<vmem>>, %arg3: memref<16x1xf32, #tpu.memory_space<vmem>>, %arg4: memref<16x1xf32, #tpu.memory_space<vmem>>, %arg5: memref<9x16x16xbf16, #tpu.memory_space<vmem>>, %arg6: memref<16x1xf32, #tpu.memory_space<vmem>>, %arg7: memref<16x1xf32, #tpu.memory_space<vmem>>, %arg8: memref<1x422xf32, #tpu.memory_space<vmem>>, %arg9: memref<1x16x384xf32, #tpu.memory_space<vmem>>) attributes {dimension_semantics = [#tpu.dimension_semantics<parallel>], iteration_bounds = array<i64: 2>, scalar_prefetch = 0 : i64, scratch_operands = 0 : i64, tpu.core_type = #tpu.core_type<tc>, window_params = [{transform_indices = @transform_0, window_bounds = array<i64: 1, 16, 486>}, {pipeline_mode = #tpu.pipeline_mode<synchronous>, transform_indices = @transform_1, window_bounds = array<i64: 9, 16, 16>}, {pipeline_mode = #tpu.pipeline_mode<synchronous>, transform_indices = @transform_2, window_bounds = array<i64: 16, 1>}, {pipeline_mode = #tpu.pipeline_mode<synchronous>, transform_indices = @transform_3, window_bounds = array<i64: 16, 1>}, {pipeline_mode = #tpu.pipeline_mode<synchronous>, transform_indices = @transform_4, window_bounds = array<i64: 9, 16, 16>}, {pipeline_mode = #tpu.pipeline_mode<synchronous>, transform_indices = @transform_5, window_bounds = array<i64: 16, 1>}, {pipeline_mode = #tpu.pipeline_mode<synchronous>, transform_indices = @transform_6, window_bounds = array<i64: 16, 1>}, {pipeline_mode = #tpu.pipeline_mode<synchronous>, transform_indices = @transform_7, window_bounds = array<i64: 1, 422>}, {transform_indices = @transform_8, window_bounds = array<i64: 1, 16, 384>}]} {
    %c0 = arith.constant 0 : index
    %c0_0 = arith.constant 0 : index
    %c0_1 = arith.constant 0 : index
    %0 = vector.load %arg1[%c0, %c0_0, %c0_1] : memref<1x16x486xbf16, #tpu.memory_space<vmem>>, vector<1x16x486xbf16>
    %1 = vector.shape_cast %0 : vector<1x16x486xbf16> to vector<16x486xbf16>
    %c0_2 = arith.constant 0 : index
    %c0_3 = arith.constant 0 : index
    %c0_4 = arith.constant 0 : index
    %2 = vector.load %arg2[%c0_2, %c0_3, %c0_4] : memref<9x16x16xbf16, #tpu.memory_space<vmem>>, vector<1x16x16xbf16>
    %3 = vector.shape_cast %2 : vector<1x16x16xbf16> to vector<16x16xbf16>
    %4 = vector.extract_strided_slice %1 {offsets = [0, 17], sizes = [16, 422], strides = [1, 1]} : vector<16x486xbf16> to vector<16x422xbf16>
    %cst = arith.constant dense<0.000000e+00> : vector<16x422xf32>
    %5 = tpu.matmul %3, %4, %cst {dimension_numbers = #tpu.dot_dimension_numbers<[1], [0], [0], [1], [0, 0, 1, 1], [], []>} : vector<16x16xbf16>, vector<16x422xbf16>, vector<16x422xf32> -> vector<16x422xf32>
    %c1 = arith.constant 1 : index
    %c0_5 = arith.constant 0 : index
    %c0_6 = arith.constant 0 : index
    %6 = vector.load %arg2[%c1, %c0_5, %c0_6] : memref<9x16x16xbf16, #tpu.memory_space<vmem>>, vector<1x16x16xbf16>
    %7 = vector.shape_cast %6 : vector<1x16x16xbf16> to vector<16x16xbf16>
    %8 = vector.extract_strided_slice %1 {offsets = [0, 18], sizes = [16, 422], strides = [1, 1]} : vector<16x486xbf16> to vector<16x422xbf16>
    %cst_7 = arith.constant dense<0.000000e+00> : vector<16x422xf32>
    %9 = tpu.matmul %7, %8, %cst_7 {dimension_numbers = #tpu.dot_dimension_numbers<[1], [0], [0], [1], [0, 0, 1, 1], [], []>} : vector<16x16xbf16>, vector<16x422xbf16>, vector<16x422xf32> -> vector<16x422xf32>
    %10 = arith.addf %5, %9 : vector<16x422xf32>
    %c2 = arith.constant 2 : index
    %c0_8 = arith.constant 0 : index
    %c0_9 = arith.constant 0 : index
    %11 = vector.load %arg2[%c2, %c0_8, %c0_9] : memref<9x16x16xbf16, #tpu.memory_space<vmem>>, vector<1x16x16xbf16>
    %12 = vector.shape_cast %11 : vector<1x16x16xbf16> to vector<16x16xbf16>
    %13 = vector.extract_strided_slice %1 {offsets = [0, 19], sizes = [16, 422], strides = [1, 1]} : vector<16x486xbf16> to vector<16x422xbf16>
    %cst_10 = arith.constant dense<0.000000e+00> : vector<16x422xf32>
    %14 = tpu.matmul %12, %13, %cst_10 {dimension_numbers = #tpu.dot_dimension_numbers<[1], [0], [0], [1], [0, 0, 1, 1], [], []>} : vector<16x16xbf16>, vector<16x422xbf16>, vector<16x422xf32> -> vector<16x422xf32>
    %15 = arith.addf %10, %14 : vector<16x422xf32>
    %c3 = arith.constant 3 : index
    %c0_11 = arith.constant 0 : index
    %c0_12 = arith.constant 0 : index
    %16 = vector.load %arg2[%c3, %c0_11, %c0_12] : memref<9x16x16xbf16, #tpu.memory_space<vmem>>, vector<1x16x16xbf16>
    %17 = vector.shape_cast %16 : vector<1x16x16xbf16> to vector<16x16xbf16>
    %18 = vector.extract_strided_slice %1 {offsets = [0, 35], sizes = [16, 422], strides = [1, 1]} : vector<16x486xbf16> to vector<16x422xbf16>
    %cst_13 = arith.constant dense<0.000000e+00> : vector<16x422xf32>
    %19 = tpu.matmul %17, %18, %cst_13 {dimension_numbers = #tpu.dot_dimension_numbers<[1], [0], [0], [1], [0, 0, 1, 1], [], []>} : vector<16x16xbf16>, vector<16x422xbf16>, vector<16x422xf32> -> vector<16x422xf32>
    %20 = arith.addf %15, %19 : vector<16x422xf32>
    %c4 = arith.constant 4 : index
    %c0_14 = arith.constant 0 : index
    %c0_15 = arith.constant 0 : index
    %21 = vector.load %arg2[%c4, %c0_14, %c0_15] : memref<9x16x16xbf16, #tpu.memory_space<vmem>>, vector<1x16x16xbf16>
    %22 = vector.shape_cast %21 : vector<1x16x16xbf16> to vector<16x16xbf16>
    %23 = vector.extract_strided_slice %1 {offsets = [0, 36], sizes = [16, 422], strides = [1, 1]} : vector<16x486xbf16> to vector<16x422xbf16>
    %cst_16 = arith.constant dense<0.000000e+00> : vector<16x422xf32>
    %24 = tpu.matmul %22, %23, %cst_16 {dimension_numbers = #tpu.dot_dimension_numbers<[1], [0], [0], [1], [0, 0, 1, 1], [], []>} : vector<16x16xbf16>, vector<16x422xbf16>, vector<16x422xf32> -> vector<16x422xf32>
    %25 = arith.addf %20, %24 : vector<16x422xf32>
    %c5 = arith.constant 5 : index
    %c0_17 = arith.constant 0 : index
    %c0_18 = arith.constant 0 : index
    %26 = vector.load %arg2[%c5, %c0_17, %c0_18] : memref<9x16x16xbf16, #tpu.memory_space<vmem>>, vector<1x16x16xbf16>
    %27 = vector.shape_cast %26 : vector<1x16x16xbf16> to vector<16x16xbf16>
    %28 = vector.extract_strided_slice %1 {offsets = [0, 37], sizes = [16, 422], strides = [1, 1]} : vector<16x486xbf16> to vector<16x422xbf16>
    %cst_19 = arith.constant dense<0.000000e+00> : vector<16x422xf32>
    %29 = tpu.matmul %27, %28, %cst_19 {dimension_numbers = #tpu.dot_dimension_numbers<[1], [0], [0], [1], [0, 0, 1, 1], [], []>} : vector<16x16xbf16>, vector<16x422xbf16>, vector<16x422xf32> -> vector<16x422xf32>
    %30 = arith.addf %25, %29 : vector<16x422xf32>
    %c6 = arith.constant 6 : index
    %c0_20 = arith.constant 0 : index
    %c0_21 = arith.constant 0 : index
    %31 = vector.load %arg2[%c6, %c0_20, %c0_21] : memref<9x16x16xbf16, #tpu.memory_space<vmem>>, vector<1x16x16xbf16>
    %32 = vector.shape_cast %31 : vector<1x16x16xbf16> to vector<16x16xbf16>
    %33 = vector.extract_strided_slice %1 {offsets = [0, 53], sizes = [16, 422], strides = [1, 1]} : vector<16x486xbf16> to vector<16x422xbf16>
    %cst_22 = arith.constant dense<0.000000e+00> : vector<16x422xf32>
    %34 = tpu.matmul %32, %33, %cst_22 {dimension_numbers = #tpu.dot_dimension_numbers<[1], [0], [0], [1], [0, 0, 1, 1], [], []>} : vector<16x16xbf16>, vector<16x422xbf16>, vector<16x422xf32> -> vector<16x422xf32>
    %35 = arith.addf %30, %34 : vector<16x422xf32>
    %c7 = arith.constant 7 : index
    %c0_23 = arith.constant 0 : index
    %c0_24 = arith.constant 0 : index
    %36 = vector.load %arg2[%c7, %c0_23, %c0_24] : memref<9x16x16xbf16, #tpu.memory_space<vmem>>, vector<1x16x16xbf16>
    %37 = vector.shape_cast %36 : vector<1x16x16xbf16> to vector<16x16xbf16>
    %38 = vector.extract_strided_slice %1 {offsets = [0, 54], sizes = [16, 422], strides = [1, 1]} : vector<16x486xbf16> to vector<16x422xbf16>
    %cst_25 = arith.constant dense<0.000000e+00> : vector<16x422xf32>
    %39 = tpu.matmul %37, %38, %cst_25 {dimension_numbers = #tpu.dot_dimension_numbers<[1], [0], [0], [1], [0, 0, 1, 1], [], []>} : vector<16x16xbf16>, vector<16x422xbf16>, vector<16x422xf32> -> vector<16x422xf32>
    %40 = arith.addf %35, %39 : vector<16x422xf32>
    %c8 = arith.constant 8 : index
    %c0_26 = arith.constant 0 : index
    %c0_27 = arith.constant 0 : index
    %41 = vector.load %arg2[%c8, %c0_26, %c0_27] : memref<9x16x16xbf16, #tpu.memory_space<vmem>>, vector<1x16x16xbf16>
    %42 = vector.shape_cast %41 : vector<1x16x16xbf16> to vector<16x16xbf16>
    %43 = vector.extract_strided_slice %1 {offsets = [0, 55], sizes = [16, 422], strides = [1, 1]} : vector<16x486xbf16> to vector<16x422xbf16>
    %cst_28 = arith.constant dense<0.000000e+00> : vector<16x422xf32>
    %44 = tpu.matmul %42, %43, %cst_28 {dimension_numbers = #tpu.dot_dimension_numbers<[1], [0], [0], [1], [0, 0, 1, 1], [], []>} : vector<16x16xbf16>, vector<16x422xbf16>, vector<16x422xf32> -> vector<16x422xf32>
    %45 = arith.addf %40, %44 : vector<16x422xf32>
    %c0_29 = arith.constant 0 : index
    %c0_30 = arith.constant 0 : index
    %46 = vector.load %arg3[%c0_29, %c0_30] : memref<16x1xf32, #tpu.memory_space<vmem>>, vector<16x1xf32>
    %47 = vector.broadcast %46 : vector<16x1xf32> to vector<16x422xf32>
    %48 = arith.mulf %45, %47 : vector<16x422xf32>
    %c0_31 = arith.constant 0 : index
    %c0_32 = arith.constant 0 : index
    %49 = vector.load %arg4[%c0_31, %c0_32] : memref<16x1xf32, #tpu.memory_space<vmem>>, vector<16x1xf32>
    %50 = vector.broadcast %49 : vector<16x1xf32> to vector<16x422xf32>
    %51 = arith.addf %48, %50 : vector<16x422xf32>
    %cst_33 = arith.constant 2.000000e-01 : f32
    %52 = vector.broadcast %cst_33 : f32 to vector<16x422xf32>
    %53 = arith.mulf %52, %51 : vector<16x422xf32>
    %54 = arith.maximumf %51, %53 : vector<16x422xf32>
    %c0_34 = arith.constant 0 : index
    %c0_35 = arith.constant 0 : index
    %55 = vector.load %arg8[%c0_34, %c0_35] : memref<1x422xf32, #tpu.memory_space<vmem>>, vector<1x422xf32>
    %56 = vector.broadcast %55 : vector<1x422xf32> to vector<16x422xf32>
    %57 = arith.mulf %54, %56 : vector<16x422xf32>
    %58 = arith.truncf %57 : vector<16x422xf32> to vector<16x422xbf16>
    %c0_36 = arith.constant 0 : index
    %c0_37 = arith.constant 0 : index
    %c0_38 = arith.constant 0 : index
    %59 = vector.load %arg5[%c0_36, %c0_37, %c0_38] : memref<9x16x16xbf16, #tpu.memory_space<vmem>>, vector<1x16x16xbf16>
    %60 = vector.shape_cast %59 : vector<1x16x16xbf16> to vector<16x16xbf16>
    %61 = vector.extract_strided_slice %58 {offsets = [0, 0], sizes = [16, 384], strides = [1, 1]} : vector<16x422xbf16> to vector<16x384xbf16>
    %cst_39 = arith.constant dense<0.000000e+00> : vector<16x384xf32>
    %62 = tpu.matmul %60, %61, %cst_39 {dimension_numbers = #tpu.dot_dimension_numbers<[1], [0], [0], [1], [0, 0, 1, 1], [], []>} : vector<16x16xbf16>, vector<16x384xbf16>, vector<16x384xf32> -> vector<16x384xf32>
    %c1_40 = arith.constant 1 : index
    %c0_41 = arith.constant 0 : index
    %c0_42 = arith.constant 0 : index
    %63 = vector.load %arg5[%c1_40, %c0_41, %c0_42] : memref<9x16x16xbf16, #tpu.memory_space<vmem>>, vector<1x16x16xbf16>
    %64 = vector.shape_cast %63 : vector<1x16x16xbf16> to vector<16x16xbf16>
    %65 = vector.extract_strided_slice %58 {offsets = [0, 1], sizes = [16, 384], strides = [1, 1]} : vector<16x422xbf16> to vector<16x384xbf16>
    %cst_43 = arith.constant dense<0.000000e+00> : vector<16x384xf32>
    %66 = tpu.matmul %64, %65, %cst_43 {dimension_numbers = #tpu.dot_dimension_numbers<[1], [0], [0], [1], [0, 0, 1, 1], [], []>} : vector<16x16xbf16>, vector<16x384xbf16>, vector<16x384xf32> -> vector<16x384xf32>
    %67 = arith.addf %62, %66 : vector<16x384xf32>
    %c2_44 = arith.constant 2 : index
    %c0_45 = arith.constant 0 : index
    %c0_46 = arith.constant 0 : index
    %68 = vector.load %arg5[%c2_44, %c0_45, %c0_46] : memref<9x16x16xbf16, #tpu.memory_space<vmem>>, vector<1x16x16xbf16>
    %69 = vector.shape_cast %68 : vector<1x16x16xbf16> to vector<16x16xbf16>
    %70 = vector.extract_strided_slice %58 {offsets = [0, 2], sizes = [16, 384], strides = [1, 1]} : vector<16x422xbf16> to vector<16x384xbf16>
    %cst_47 = arith.constant dense<0.000000e+00> : vector<16x384xf32>
    %71 = tpu.matmul %69, %70, %cst_47 {dimension_numbers = #tpu.dot_dimension_numbers<[1], [0], [0], [1], [0, 0, 1, 1], [], []>} : vector<16x16xbf16>, vector<16x384xbf16>, vector<16x384xf32> -> vector<16x384xf32>
    %72 = arith.addf %67, %71 : vector<16x384xf32>
    %c3_48 = arith.constant 3 : index
    %c0_49 = arith.constant 0 : index
    %c0_50 = arith.constant 0 : index
    %73 = vector.load %arg5[%c3_48, %c0_49, %c0_50] : memref<9x16x16xbf16, #tpu.memory_space<vmem>>, vector<1x16x16xbf16>
    %74 = vector.shape_cast %73 : vector<1x16x16xbf16> to vector<16x16xbf16>
    %75 = vector.extract_strided_slice %58 {offsets = [0, 18], sizes = [16, 384], strides = [1, 1]} : vector<16x422xbf16> to vector<16x384xbf16>
    %cst_51 = arith.constant dense<0.000000e+00> : vector<16x384xf32>
    %76 = tpu.matmul %74, %75, %cst_51 {dimension_numbers = #tpu.dot_dimension_numbers<[1], [0], [0], [1], [0, 0, 1, 1], [], []>} : vector<16x16xbf16>, vector<16x384xbf16>, vector<16x384xf32> -> vector<16x384xf32>
    %77 = arith.addf %72, %76 : vector<16x384xf32>
    %c4_52 = arith.constant 4 : index
    %c0_53 = arith.constant 0 : index
    %c0_54 = arith.constant 0 : index
    %78 = vector.load %arg5[%c4_52, %c0_53, %c0_54] : memref<9x16x16xbf16, #tpu.memory_space<vmem>>, vector<1x16x16xbf16>
    %79 = vector.shape_cast %78 : vector<1x16x16xbf16> to vector<16x16xbf16>
    %80 = vector.extract_strided_slice %58 {offsets = [0, 19], sizes = [16, 384], strides = [1, 1]} : vector<16x422xbf16> to vector<16x384xbf16>
    %cst_55 = arith.constant dense<0.000000e+00> : vector<16x384xf32>
    %81 = tpu.matmul %79, %80, %cst_55 {dimension_numbers = #tpu.dot_dimension_numbers<[1], [0], [0], [1], [0, 0, 1, 1], [], []>} : vector<16x16xbf16>, vector<16x384xbf16>, vector<16x384xf32> -> vector<16x384xf32>
    %82 = arith.addf %77, %81 : vector<16x384xf32>
    %c5_56 = arith.constant 5 : index
    %c0_57 = arith.constant 0 : index
    %c0_58 = arith.constant 0 : index
    %83 = vector.load %arg5[%c5_56, %c0_57, %c0_58] : memref<9x16x16xbf16, #tpu.memory_space<vmem>>, vector<1x16x16xbf16>
    %84 = vector.shape_cast %83 : vector<1x16x16xbf16> to vector<16x16xbf16>
    %85 = vector.extract_strided_slice %58 {offsets = [0, 20], sizes = [16, 384], strides = [1, 1]} : vector<16x422xbf16> to vector<16x384xbf16>
    %cst_59 = arith.constant dense<0.000000e+00> : vector<16x384xf32>
    %86 = tpu.matmul %84, %85, %cst_59 {dimension_numbers = #tpu.dot_dimension_numbers<[1], [0], [0], [1], [0, 0, 1, 1], [], []>} : vector<16x16xbf16>, vector<16x384xbf16>, vector<16x384xf32> -> vector<16x384xf32>
    %87 = arith.addf %82, %86 : vector<16x384xf32>
    %c6_60 = arith.constant 6 : index
    %c0_61 = arith.constant 0 : index
    %c0_62 = arith.constant 0 : index
    %88 = vector.load %arg5[%c6_60, %c0_61, %c0_62] : memref<9x16x16xbf16, #tpu.memory_space<vmem>>, vector<1x16x16xbf16>
    %89 = vector.shape_cast %88 : vector<1x16x16xbf16> to vector<16x16xbf16>
    %90 = vector.extract_strided_slice %58 {offsets = [0, 36], sizes = [16, 384], strides = [1, 1]} : vector<16x422xbf16> to vector<16x384xbf16>
    %cst_63 = arith.constant dense<0.000000e+00> : vector<16x384xf32>
    %91 = tpu.matmul %89, %90, %cst_63 {dimension_numbers = #tpu.dot_dimension_numbers<[1], [0], [0], [1], [0, 0, 1, 1], [], []>} : vector<16x16xbf16>, vector<16x384xbf16>, vector<16x384xf32> -> vector<16x384xf32>
    %92 = arith.addf %87, %91 : vector<16x384xf32>
    %c7_64 = arith.constant 7 : index
    %c0_65 = arith.constant 0 : index
    %c0_66 = arith.constant 0 : index
    %93 = vector.load %arg5[%c7_64, %c0_65, %c0_66] : memref<9x16x16xbf16, #tpu.memory_space<vmem>>, vector<1x16x16xbf16>
    %94 = vector.shape_cast %93 : vector<1x16x16xbf16> to vector<16x16xbf16>
    %95 = vector.extract_strided_slice %58 {offsets = [0, 37], sizes = [16, 384], strides = [1, 1]} : vector<16x422xbf16> to vector<16x384xbf16>
    %cst_67 = arith.constant dense<0.000000e+00> : vector<16x384xf32>
    %96 = tpu.matmul %94, %95, %cst_67 {dimension_numbers = #tpu.dot_dimension_numbers<[1], [0], [0], [1], [0, 0, 1, 1], [], []>} : vector<16x16xbf16>, vector<16x384xbf16>, vector<16x384xf32> -> vector<16x384xf32>
    %97 = arith.addf %92, %96 : vector<16x384xf32>
    %c8_68 = arith.constant 8 : index
    %c0_69 = arith.constant 0 : index
    %c0_70 = arith.constant 0 : index
    %98 = vector.load %arg5[%c8_68, %c0_69, %c0_70] : memref<9x16x16xbf16, #tpu.memory_space<vmem>>, vector<1x16x16xbf16>
    %99 = vector.shape_cast %98 : vector<1x16x16xbf16> to vector<16x16xbf16>
    %100 = vector.extract_strided_slice %58 {offsets = [0, 38], sizes = [16, 384], strides = [1, 1]} : vector<16x422xbf16> to vector<16x384xbf16>
    %cst_71 = arith.constant dense<0.000000e+00> : vector<16x384xf32>
    %101 = tpu.matmul %99, %100, %cst_71 {dimension_numbers = #tpu.dot_dimension_numbers<[1], [0], [0], [1], [0, 0, 1, 1], [], []>} : vector<16x16xbf16>, vector<16x384xbf16>, vector<16x384xf32> -> vector<16x384xf32>
    %102 = arith.addf %97, %101 : vector<16x384xf32>
    %c0_72 = arith.constant 0 : index
    %c0_73 = arith.constant 0 : index
    %103 = vector.load %arg6[%c0_72, %c0_73] : memref<16x1xf32, #tpu.memory_space<vmem>>, vector<16x1xf32>
    %104 = vector.broadcast %103 : vector<16x1xf32> to vector<16x384xf32>
    %105 = arith.mulf %102, %104 : vector<16x384xf32>
    %c0_74 = arith.constant 0 : index
    %c0_75 = arith.constant 0 : index
    %106 = vector.load %arg7[%c0_74, %c0_75] : memref<16x1xf32, #tpu.memory_space<vmem>>, vector<16x1xf32>
    %107 = vector.broadcast %106 : vector<16x1xf32> to vector<16x384xf32>
    %108 = arith.addf %105, %107 : vector<16x384xf32>
    %109 = vector.extract_strided_slice %1 {offsets = [0, 55], sizes = [16, 384], strides = [1, 1]} : vector<16x486xbf16> to vector<16x384xbf16>
    %110 = arith.extf %109 : vector<16x384xbf16> to vector<16x384xf32>
    %111 = arith.addf %108, %110 : vector<16x384xf32>
    %cst_76 = arith.constant 2.000000e-01 : f32
    %112 = vector.broadcast %cst_76 : f32 to vector<16x384xf32>
    %113 = arith.mulf %112, %111 : vector<16x384xf32>
    %114 = arith.maximumf %111, %113 : vector<16x384xf32>
    %c0_77 = arith.constant 0 : index
    %c0_78 = arith.constant 0 : index
    %c0_79 = arith.constant 0 : index
    %115 = vector.load %arg9[%c0_77, %c0_78, %c0_79] : memref<1x16x384xf32, #tpu.memory_space<vmem>>, vector<1x16x384xf32>
    %116 = vector.shape_cast %115 : vector<1x16x384xf32> to vector<16x384xf32>
    %117 = vector.shape_cast %114 : vector<16x384xf32> to vector<1x16x384xf32>
    tpu.vector_store %arg9[%c0_77, %c0_78, %c0_79], %117 {strides = array<i32>} : memref<1x16x384xf32, #tpu.memory_space<vmem>>, vector<1x16x384xf32>,
    return
  }
  func.func @transform_0(%arg0: i32) -> (i32, i32, i32) {
    %c0_i32 = arith.constant 0 : i32
    %c0_i32_0 = arith.constant 0 : i32
    %c0_i32_1 = arith.constant 0 : i32
    return %arg0, %c0_i32, %c0_i32_0 : i32, i32, i32
  }
  func.func @transform_1(%arg0: i32) -> (i32, i32, i32) {
    %c0_i32 = arith.constant 0 : i32
    %c0_i32_0 = arith.constant 0 : i32
    %c0_i32_1 = arith.constant 0 : i32
    %c0_i32_2 = arith.constant 0 : i32
    return %c0_i32, %c0_i32_0, %c0_i32_1 : i32, i32, i32
  }
  func.func @transform_2(%arg0: i32) -> (i32, i32) {
    %c0_i32 = arith.constant 0 : i32
    %c0_i32_0 = arith.constant 0 : i32
    %c0_i32_1 = arith.constant 0 : i32
    return %c0_i32, %c0_i32_0 : i32, i32
  }
  func.func @transform_3(%arg0: i32) -> (i32, i32) {
    %c0_i32 = arith.constant 0 : i32
    %c0_i32_0 = arith.constant 0 : i32
    %c0_i32_1 = arith.constant 0 : i32
    return %c0_i32, %c0_i32_0 : i32, i32
  }
  func.func @transform_4(%arg0: i32) -> (i32, i32, i32) {
    %c0_i32 = arith.constant 0 : i32
    %c0_i32_0 = arith.constant 0 : i32
    %c0_i32_1 = arith.constant 0 : i32
    %c0_i32_2 = arith.constant 0 : i32
    return %c0_i32, %c0_i32_0, %c0_i32_1 : i32, i32, i32
  }
  func.func @transform_5(%arg0: i32) -> (i32, i32) {
    %c0_i32 = arith.constant 0 : i32
    %c0_i32_0 = arith.constant 0 : i32
    %c0_i32_1 = arith.constant 0 : i32
    return %c0_i32, %c0_i32_0 : i32, i32
  }
  func.func @transform_6(%arg0: i32) -> (i32, i32) {
    %c0_i32 = arith.constant 0 : i32
    %c0_i32_0 = arith.constant 0 : i32
    %c0_i32_1 = arith.constant 0 : i32
    return %c0_i32, %c0_i32_0 : i32, i32
  }
  func.func @transform_7(%arg0: i32) -> (i32, i32) {
    %c0_i32 = arith.constant 0 : i32
    %c0_i32_0 = arith.constant 0 : i32
    %c0_i32_1 = arith.constant 0 : i32
    return %c0_i32, %c0_i32_0 : i32, i32
  }
  func.func @transform_8(%arg0: i32) -> (i32, i32, i32) {
    %c0_i32 = arith.constant 0 : i32
    %c0_i32_0 = arith.constant 0 : i32
    %c0_i32_1 = arith.constant 0 : i32
    return %arg0, %c0_i32, %c0_i32_0 : i32, i32, i32
  }
}

</mosaic_0001>

<bundles_post_ra>
// kernel: basic_block_forward.1
= control target key start
LH: loop header
LB: loop body
LE: loop exit
PB: predicated region body
PF: predicated region fallthrough
CT: control target
= control target key end

     0   :  { %s3105_s27 = smov 0   ;;  %s3444_s0 = inlined_call_operand.vmem [shape: bf16[2,16,486], index: 0, kind: input, shape index: {}]   ;;  %s3445_s1 = inlined_call_operand.vmem [shape: bf16[9,16,16], index: 1, kind: input, shape index: {}]   ;;  %s3446_s2 = inlined_call_operand.vmem [shape: f32[16,1], index: 2, kind: input, shape index: {}]   ;;  %s3447_s3 = inlined_call_operand.vmem [shape: f32[16,1], index: 3, kind: input, shape index: {}]   ;;  %s3448_s4 = inlined_call_operand.vmem [shape: bf16[9,16,16], index: 4, kind: input, shape index: {}]   ;;  %s3449_s5 = inlined_call_operand.vmem [shape: f32[16,1], index: 5, kind: input, shape index: {}]   ;;  %s3450_s6 = inlined_call_operand.vmem [shape: f32[16,1], index: 6, kind: input, shape index: {}]   ;;  %s3451_s7 = inlined_call_operand.vmem [shape: f32[1,422], index: 7, kind: input, shape index: {}]   ;;  %s3452_s8 = inlined_call_operand.vmem [shape: f32[2,16,384], index: 8, kind: output, shape index: {}]  }
   0x1 LB: > { %s2666_s28 = sadd.s32 4294967295, %s3042_s27   ;;  %p2670_p0 = scmp.ge.s32.totalorder %s3042_s27, 1  ;;  %s3042_s27 = sphi %s3105_s27, %s18_s27  }
   0x2   : > { %p262_p1 = scmp.lt.s32.totalorder %s3042_s27, 3 }
   0x4   : > { %p263_p2 = pnand %p2670_p0, %p262_p1 }
   0x5   : > { %p296_p3 = scmp.lt.s32.totalorder (!%p263_p2), %s2666_s28, 1  ;;  %v3044_v0 = vmov (!%p263_p2), 0   ;;  %s3045_s11 = smov (!%p263_p2), 110   ;;  %v1400_v9 = vld [vmem:[%s3446_s2] sm:$0xff] (!%p263_p2)  ;;  %v1401_v10 = vld [vmem:[%s3446_s2 + $0x8] sm:$0xff] (!%p263_p2)  ;;  %vm345_vm0 = vcmask (!%p263_p2), 900096  }
   0x6   : > { %266 = sbr.rel (%p263_p2) target bundleno = 911 (0x38f), region = 52  ;;  %432 = vmatprep.mubr.bf16.mxu1 (!%p263_p2), %v3044_v0  ;;  %389 = vmatprep.mubr.bf16.mxu0 (!%p263_p2), %v3044_v0  ;;  %s3046_s12 = smov (!%p263_p2), 111   ;;  %v1421_v11 = vld [vmem:[%s3447_s3 + $0x8] sm:$0xff] (!%p263_p2)  ;;  %v1420_v12 = vld [vmem:[%s3447_s3] sm:$0xff] (!%p263_p2)  ;;  %vm353_vm1 = vcmask (!%p263_p2), 130048   ;;  %vm456_vm2 = vcmask (!%p263_p2), 908288  }
   0x7   : > { %2993 = vset.pattern.permute.xlu1 (!%p263_p2), %v3044_v0  ;;  %2992 = vset.pattern.permute.xlu0 (!%p263_p2), %v3044_v0  ;;  %s3047_s13 = smov (!%p263_p2), 109   ;;  %s3048_s14 = smov (!%p263_p2), 93   ;;  %v3018_v19 = vld [vmem:[%s3445_s1 + $0x8] sm:$0xff] (!%p263_p2)   ;;  %vm569_vm3 = vcmask (!%p263_p2), 891904   ;;  %v3019_v30 = vld [vmem:[%s3445_s1] sm:$0xff] (!%p263_p2)   ;;  %vm690_vm4 = vcmask (!%p263_p2), 760832  }
   0x8   : > { %s3049_s15 = smov (!%p263_p2), 92   ;;  %s3050_s16 = smov (!%p263_p2), 91   ;;  %v3020_v41 = vld [vmem:[%s3445_s1 + $0x10] sm:$0xff] (!%p263_p2)   ;;  %vm811_vm5 = vcmask (!%p263_p2), 752640   ;;  %v3021_v50 = vld [vmem:[%s3445_s1 + $0x18] sm:$0xff] (!%p263_p2)   ;;  %vm932_vm6 = vcmask (!%p263_p2), 744448  }
   0x9   : > { %s3051_s17 = smov (!%p263_p2), 75   ;;  %s3052_s18 = smov (!%p263_p2), 74   ;;  %v3022_v58 = vld [vmem:[%s3445_s1 + $0x20] sm:$0xff] (!%p263_p2)   ;;  %vm1053_vm7 = vcmask (!%p263_p2), 613376   ;;  %vm1174_vm8 = vcmask (!%p263_p2), 605184   ;;  %vm1295_vm9 = vcmask (!%p263_p2), 596992  }
   0xa   : > { %s3053_s19 = smov (!%p263_p2), 73   ;;  %vm3055_vm10 = vmmov (!%p263_p2), 0   ;;  %s3058_s20 = smov (!%p263_p2), 108   ;;  %vm1512_vm11 = vcmask (!%p263_p2), 1039360   ;;  %vm1714_vm12 = vcmask (!%p263_p2), 1031168   ;;  %vm2060_vm13 = vcmask (!%p263_p2), 883712  }
   0xb   : > { %vm2406_vm14 = vcmask (!%p263_p2), 736256  }
   0xd   : > { %s3454_s28 = smov (!%p296_p3, %s2666_s28), 1 }
   0xe   : > { %s2766_s29 = sshll.u32 %s3454_s28, 5 }
   0xf   : > { %s300_s10 = scalar_lea.vmem %s3444_s0, %s2766_s29 }
  0x10   : > { %v3123_v1 = vld [vmem:[%s300_s10] sm:$0xff]  ;;  %v3125_v2 = vld [vmem:[%s300_s10 + $0x10] sm:$0xff]  ;;  %v3127_v3 = vld [vmem:[%s300_s10 + $0x8] sm:$0xff] }
  0x11   : > { %v2678_v4 = vcombine.high %v3123_v1, %v3125_v2  ;;  %v2677_v5 = vcombine.low %v3123_v1, %v3125_v2  ;;  %v3133_v6 = vld [vmem:[%s300_s10 + $0x18] sm:$0xff] }
  0x12   : > { %v2679_v7 = vcombine.low %v3127_v3, %v3133_v6  ;;  %v2680_v8 = vcombine.high %v3127_v3, %v3133_v6 }
  0x13   : > { %339 = vrot.lane.b32.xlu0 %v2678_v4, %s3045_s11  ;;  %337 = vrot.lane.b32.xlu1 %v2677_v5, %s3045_s11 }
  0x17   : > { %341 = vrot.lane.b32.xlu0 %v2679_v7, %s3045_s11  ;;  %343 = vrot.lane.b32.xlu1 %v2680_v8, %s3045_s11 }
  0x1b   : > { %450 = vrot.lane.b32.xlu0 %v2678_v4, %s3046_s12  ;;  %452 = vrot.lane.b32.xlu1 %v2679_v7, %s3046_s12 }
  0x1f   : > { %448 = vrot.lane.b32.xlu0 %v2677_v5, %s3046_s12  ;;  %454 = vrot.lane.b32.xlu1 %v2680_v8, %s3046_s12 }
  0x23   : > { %563 = vrot.lane.b32.xlu0 %v2678_v4, %s3047_s13  ;;  %565 = vrot.lane.b32.xlu1 %v2679_v7, %s3047_s13 }
  0x27   : > { %561 = vrot.lane.b32.xlu0 %v2677_v5, %s3047_s13  ;;  %567 = vrot.lane.b32.xlu1 %v2680_v8, %s3047_s13 }
  0x2b   : > { %684 = vrot.lane.b32.xlu0 %v2678_v4, %s3048_s14  ;;  %686 = vrot.lane.b32.xlu1 %v2679_v7, %s3048_s14 }
  0x2f   : > { %682 = vrot.lane.b32.xlu0 %v2677_v5, %s3048_s14  ;;  %688 = vrot.lane.b32.xlu1 %v2680_v8, %s3048_s14 }
  0x33   : > { %805 = vrot.lane.b32.xlu0 %v2678_v4, %s3049_s15  ;;  %807 = vrot.lane.b32.xlu1 %v2679_v7, %s3049_s15 }
  0x37   : > { %803 = vrot.lane.b32.xlu0 %v2677_v5, %s3049_s15  ;;  %809 = vrot.lane.b32.xlu1 %v2680_v8, %s3049_s15 }
  0x3b   : > { %926 = vrot.lane.b32.xlu0 %v2678_v4, %s3050_s16  ;;  %928 = vrot.lane.b32.xlu1 %v2679_v7, %s3050_s16 }
  0x3f   : > { %924 = vrot.lane.b32.xlu0 %v2677_v5, %s3050_s16  ;;  %930 = vrot.lane.b32.xlu1 %v2680_v8, %s3050_s16 }
  0x43   : > { %1047 = vrot.lane.b32.xlu0 %v2678_v4, %s3051_s17  ;;  %1049 = vrot.lane.b32.xlu1 %v2679_v7, %s3051_s17 }
  0x47   : > { %1045 = vrot.lane.b32.xlu0 %v2677_v5, %s3051_s17  ;;  %1051 = vrot.lane.b32.xlu1 %v2680_v8, %s3051_s17  ;;  %s3056_s17 = smov 127  }
  0x4b   : > { %1168 = vrot.lane.b32.xlu0 %v2678_v4, %s3052_s18  ;;  %1170 = vrot.lane.b32.xlu1 %v2679_v7, %s3052_s18 }
  0x4f   : > { %1166 = vrot.lane.b32.xlu0 %v2677_v5, %s3052_s18  ;;  %1172 = vrot.lane.b32.xlu1 %v2680_v8, %s3052_s18  ;;  %s3057_s18 = smov 126  }
  0x53   : > { %1289 = vrot.lane.b32.xlu0 %v2678_v4, %s3053_s19  ;;  %1291 = vrot.lane.b32.xlu1 %v2679_v7, %s3053_s19  ;;  %v3023_v7 = vld [vmem:[%s3445_s1 + $0x28] sm:$0xff]  }
  0x57   : > { %1287 = vrot.lane.b32.xlu0 %v2677_v5, %s3053_s19  ;;  %1293 = vrot.lane.b32.xlu1 %v2680_v8, %s3053_s19 }
  0x5b   : > { %1404 = vperm.xlu0 %2992, %v1400_v9   ;;  %1409 = vperm.xlu1 %2993, %v1401_v10  }
  0x5f   : > { %1429 = vperm.xlu0 %2992, %v1421_v11   ;;  %1424 = vperm.xlu1 %2993, %v1420_v12  }
  0x85   : > { %v340_v13 = vpop.permute.xlu0 %339  ;;  %v338_v14 = vpop.permute.xlu1 %337 }
  0x86   : > { %v346_v20 = vsel %vm345_vm0, %v338_v14, %v340_v13 }
  0x89   : > { %v342_v15 = vpop.permute.xlu0 %341  ;;  %v344_v16 = vpop.permute.xlu1 %343 }
  0x8a   : > { %400 = vmatprep.subr.bf16.mxu1 %v344_v16  ;;  %v347_v17 = vsel %vm345_vm0, %v340_v13, %v342_v15  ;;  %v348_v18 = vsel %vm345_vm0, %v342_v15, %v344_v16  ;;  %v3024_v15 = vld [vmem:[%s3445_s1 + $0x30] sm:$0xff]  }
  0x8b   : > { %357 = vmatprep.subr.bf16.mxu0 %v347_v17  ;;  %401 = vmatpush1.bf16.msra.mxu1 %v348_v18 }
  0x8c   : > { %358 = vmatpush1.bf16.msra.mxu0 %v346_v20 }
  0x8d   : > { %v451_v21 = vpop.permute.xlu0 %450  ;;  %v453_v22 = vpop.permute.xlu1 %452 }
  0x8e   : > { %2682 = vmatmul.mubr.msk.bf16.vlgmr.msra.gmra.mrb[0].mxu1 %vm353_vm1, %v3018_v19  ;;  %v458_v23 = vsel %vm456_vm2, %v451_v21, %v453_v22 }
  0x8f   : > { %2681 = vmatmul.mubr.msk.bf16.vlgmr.msra.gmra.mrb[0].mxu0 %vm353_vm1, %v3018_v19  ;;  %467 = vmatprep.subr.bf16.mxu0 %v458_v23 }
  0x90   : > { %542 = vmatprep.mubr.bf16.mxu1 %v3044_v0  ;;  %499 = vmatprep.mubr.bf16.mxu0 %v3044_v0 }
  0x91   : > { %v449_v24 = vpop.permute.xlu0 %448  ;;  %v455_v25 = vpop.permute.xlu1 %454 }
  0x92   : > { %v457_v26 = vsel %vm456_vm2, %v449_v24, %v451_v21  ;;  %v459_v27 = vsel %vm456_vm2, %v453_v22, %v455_v25  ;;  %510 = vmatprep.subr.bf16.mxu1 %v455_v25  ;;  %v3025_v22 = vld [vmem:[%s3445_s1 + $0x38] sm:$0xff]   ;;  %v3026_v25 = vld [vmem:[%s3445_s1 + $0x40] sm:$0xff]  }
  0x93   : > { %468 = vmatpush1.bf16.msra.mxu0 %v457_v26  ;;  %511 = vmatpush1.bf16.msra.mxu1 %v459_v27  ;;  %v1458_v26 = vlaneseq }
  0x95   : > { %v564_v28 = vpop.permute.xlu0 %563  ;;  %v566_v29 = vpop.permute.xlu1 %565  ;;  %v1459_v27 = vshrl.u32 %v1458_v26, 7 }
  0x96   : > { %v571_v31 = vsel %vm569_vm3, %v564_v28, %v566_v29 }
  0x97   : > { %580 = vmatprep.subr.bf16.mxu0 %v571_v31  ;;  %v1456_v31 = vld [vmem:[%s3451_s7] sm:$0xf] }
  0x99   : > { %v562_v32 = vpop.permute.xlu0 %561  ;;  %v568_v33 = vpop.permute.xlu1 %567 }
  0x9a   : > { %v570_v34 = vsel %vm569_vm3, %v562_v32, %v564_v28  ;;  %2685 = vmatmul.mubr.msk.bf16.vlgmr.msra.gmra.mrb[0].mxu1 %vm353_vm1, %v3019_v30  ;;  %v572_v35 = vsel %vm569_vm3, %v566_v29, %v568_v33  ;;  %623 = vmatprep.subr.bf16.mxu1 %v568_v33  ;;  %v1468_v29 = vsub.s32 2, %v1459_v27  ;;  %v1460_v32 = vsub.s32 0, %v1459_v27 }
  0x9b   : > { %2684 = vmatmul.mubr.msk.bf16.vlgmr.msra.gmra.mrb[0].mxu0 %vm353_vm1, %v3019_v30  ;;  %624 = vmatpush1.bf16.msra.mxu1 %v572_v35  ;;  %v1472_v33 = vsub.s32 3, %v1459_v27 }
  0x9c   : > { %581 = vmatpush1.bf16.msra.mxu0 %v570_v34  ;;  %655 = vmatprep.mubr.bf16.mxu1 %v3044_v0 }
  0x9d   : > { %v685_v36 = vpop.permute.xlu0 %684  ;;  %v687_v37 = vpop.permute.xlu1 %686  ;;  %612 = vmatprep.mubr.bf16.mxu0 %v3044_v0 }
  0x9e   : > { %v692_v38 = vsel %vm690_vm4, %v685_v36, %v687_v37 }
  0x9f   : > { %701 = vmatprep.subr.bf16.mxu0 %v692_v38 }
  0xa1   : > { %v683_v39 = vpop.permute.xlu0 %682  ;;  %v689_v40 = vpop.permute.xlu1 %688 }
  0xa2   : > { %744 = vmatprep.subr.bf16.mxu1 %v689_v40  ;;  %v693_v42 = vsel %vm690_vm4, %v687_v37, %v689_v40  ;;  %v691_v43 = vsel %vm690_vm4, %v683_v39, %v685_v36  ;;  %v1469_v39 = vrot.slane %v1456_v31, %v1468_v29 }
  0xa5   : > { %v806_v44 = vpop.permute.xlu0 %805  ;;  %v808_v45 = vpop.permute.xlu1 %807 }
  0xa6   : > { %2690 = vmatmul.mubr.msk.bf16.vlgmr.msra.gmra.mrb[0].mxu1 %vm353_vm1, %v3020_v41  ;;  %v813_v46 = vsel %vm811_vm5, %v806_v44, %v808_v45 }
  0xa7   : > { %2689 = vmatmul.mubr.msk.bf16.vlgmr.msra.gmra.mrb[0].mxu0 %vm353_vm1, %v3020_v41  ;;  %745 = vmatpush1.bf16.msra.mxu1 %v693_v42 }
  0xa8   : > { %702 = vmatpush1.bf16.msra.mxu0 %v691_v43  ;;  %776 = vmatprep.mubr.bf16.mxu1 %v3044_v0 }
  0xa9   : > { %733 = vmatprep.mubr.bf16.mxu0 %v3044_v0  ;;  %822 = vmatprep.subr.bf16.mxu0 %v813_v46  ;;  %v810_v47 = vpop.permute.xlu1 %809  ;;  %v804_v48 = vpop.permute.xlu0 %803 }
  0xaa   : > { %865 = vmatprep.subr.bf16.mxu1 %v810_v47  ;;  %v814_v51 = vsel %vm811_vm5, %v808_v45, %v810_v47  ;;  %v812_v52 = vsel %vm811_vm5, %v804_v48, %v806_v44  ;;  %v1461_v44 = vrot.slane %v1456_v31, %v1460_v32  ;;  %v1464_v45 = vsub.s32 1, %v1459_v27 }
  0xad   : > { %v929_v49 = vpop.permute.xlu1 %928  ;;  %v927_v53 = vpop.permute.xlu0 %926 }
  0xae   : > { %v934_v54 = vsel %vm932_vm6, %v927_v53, %v929_v49 }
  0xb1   : > { %v931_v55 = vpop.permute.xlu1 %930  ;;  %v925_v56 = vpop.permute.xlu0 %924 }
  0xb2   : > { %2695 = vmatmul.mubr.msk.bf16.vlgmr.msra.gmra.mrb[0].mxu1 %vm353_vm1, %v3021_v50  ;;  %v935_v59 = vsel %vm932_vm6, %v929_v49, %v931_v55  ;;  %v933_v60 = vsel %vm932_vm6, %v925_v56, %v927_v53 }
  0xb3   : > { %2694 = vmatmul.mubr.msk.bf16.vlgmr.msra.gmra.mrb[0].mxu0 %vm353_vm1, %v3021_v50  ;;  %866 = vmatpush1.bf16.msra.mxu1 %v814_v51  ;;  %v1473_v51 = vrot.slane %v1456_v31, %v1472_v33 }
  0xb4   : > { %823 = vmatpush1.bf16.msra.mxu0 %v812_v52  ;;  %897 = vmatprep.mubr.bf16.mxu1 %v3044_v0 }
  0xb5   : > { %854 = vmatprep.mubr.bf16.mxu0 %v3044_v0  ;;  %943 = vmatprep.subr.bf16.mxu0 %v934_v54  ;;  %v1050_v57 = vpop.permute.xlu1 %1049  ;;  %v1048_v61 = vpop.permute.xlu0 %1047 }
  0xb6   : > { %986 = vmatprep.subr.bf16.mxu1 %v931_v55  ;;  %v1055_v62 = vsel %vm1053_vm7, %v1048_v61, %v1050_v57 }
  0xb9   : > { %v1052_v63 = vpop.permute.xlu1 %1051  ;;  %v1046_v4 = vpop.permute.xlu0 %1045 }
  0xba   : > { %v1056_v8 = vsel %vm1053_vm7, %v1050_v57, %v1052_v63  ;;  %v1054_v9 = vsel %vm1053_vm7, %v1046_v4, %v1048_v61 }
  0xbd   : > { %v1171_v5 = vpop.permute.xlu1 %1170  ;;  %v1169_v10 = vpop.permute.xlu0 %1168 }
  0xbe   : > { %2700 = vmatmul.mubr.msk.bf16.vlgmr.msra.gmra.mrb[0].mxu1 %vm353_vm1, %v3022_v58  ;;  %v1176_v11 = vsel %vm1174_vm8, %v1169_v10, %v1171_v5 }
  0xbf   : > { %2699 = vmatmul.mubr.msk.bf16.vlgmr.msra.gmra.mrb[0].mxu0 %vm353_vm1, %v3022_v58  ;;  %987 = vmatpush1.bf16.msra.mxu1 %v935_v59 }
  0xc0   : > { %944 = vmatpush1.bf16.msra.mxu0 %v933_v60  ;;  %1018 = vmatprep.mubr.bf16.mxu1 %v3044_v0 }
  0xc1   : > { %975 = vmatprep.mubr.bf16.mxu0 %v3044_v0  ;;  %1064 = vmatprep.subr.bf16.mxu0 %v1055_v62  ;;  %v1173_v12 = vpop.permute.xlu1 %1172  ;;  %v1167_v13 = vpop.permute.xlu0 %1166 }
  0xc2   : > { %1107 = vmatprep.subr.bf16.mxu1 %v1052_v63  ;;  %v1177_v16 = vsel %vm1174_vm8, %v1171_v5, %v1173_v12  ;;  %v1175_v17 = vsel %vm1174_vm8, %v1167_v13, %v1169_v10 }
  0xc5   : > { %v1292_v14 = vpop.permute.xlu1 %1291  ;;  %v1290_v18 = vpop.permute.xlu0 %1289 }
  0xc6   : > { %v1297_v19 = vsel %vm1295_vm9, %v1290_v18, %v1292_v14 }
  0xc9   : > { %v1294_v20 = vpop.permute.xlu1 %1293  ;;  %v1288_v21 = vpop.permute.xlu0 %1287 }
  0xca   : > { %2705 = vmatmul.mubr.msk.bf16.vlgmr.msra.gmra.mrb[0].mxu1 %vm353_vm1, %v3023_v7  ;;  %v1298_v23 = vsel %vm1295_vm9, %v1292_v14, %v1294_v20  ;;  %v1296_v24 = vsel %vm1295_vm9, %v1288_v21, %v1290_v18  ;;  %v1465_v18 = vrot.slane %v1456_v31, %v1464_v45  ;;  %v2546_v45 = vunpack.c.l.bf16 %v3125_v2 }
  0xcb   : > { %2704 = vmatmul.mubr.msk.bf16.vlgmr.msra.gmra.mrb[0].mxu0 %vm353_vm1, %v3023_v7  ;;  %1108 = vmatpush1.bf16.msra.mxu1 %v1056_v8 }
  0xcc   : > { %1065 = vmatpush1.bf16.msra.mxu0 %v1054_v9  ;;  %1139 = vmatprep.mubr.bf16.mxu1 %v3044_v0 }
  0xcd   : > { %1096 = vmatprep.mubr.bf16.mxu0 %v3044_v0  ;;  %1185 = vmatprep.subr.bf16.mxu0 %v1176_v11 }
  0xce   : > { %1228 = vmatprep.subr.bf16.mxu1 %v1173_v12 }
  0xd6   : > { %2710 = vmatmul.mubr.msk.bf16.vlgmr.msra.gmra.mrb[0].mxu1 %vm353_vm1, %v3024_v15 }
  0xd7   : > { %2709 = vmatmul.mubr.msk.bf16.vlgmr.msra.gmra.mrb[0].mxu0 %vm353_vm1, %v3024_v15  ;;  %1229 = vmatpush1.bf16.msra.mxu1 %v1177_v16 }
  0xd8   : > { %1186 = vmatpush1.bf16.msra.mxu0 %v1175_v17  ;;  %1260 = vmatprep.mubr.bf16.mxu1 %v3044_v0 }
  0xd9   : > { %1217 = vmatprep.mubr.bf16.mxu0 %v3044_v0  ;;  %1306 = vmatprep.subr.bf16.mxu0 %v1297_v19 }
  0xda   : > { %1349 = vmatprep.subr.bf16.mxu1 %v1294_v20  ;;  %v1410_v28 = vpop.permute.xlu1 %1409  ;;  %v1405_v30 = vpop.permute.xlu0 %1404 }
  0xde   : > { %v1425_v35 = vpop.permute.xlu1 %1424  ;;  %v1430_v52 = vpop.permute.xlu0 %1429 }
  0xe2   : > { %2715 = vmatmul.mubr.msk.bf16.vlgmr.msra.gmra.mrb[0].mxu1 %vm353_vm1, %v3025_v22 }
  0xe3   : > { %2714 = vmatmul.mubr.msk.bf16.vlgmr.msra.gmra.mrb[0].mxu0 %vm353_vm1, %v3025_v22  ;;  %1350 = vmatpush1.bf16.msra.mxu1 %v1298_v23 }
  0xe4   : > { %1307 = vmatpush1.bf16.msra.mxu0 %v1296_v24  ;;  %1381 = vmatprep.mubr.bf16.mxu1 %v3044_v0 }
  0xe5   : > { %1338 = vmatprep.mubr.bf16.mxu0 %v3044_v0 }
  0xee   : > { %2720 = vmatmul.mubr.msk.bf16.vlgmr.msra.gmra.mrb[0].mxu1 %vm353_vm1, %v3026_v25 }
  0xef   : > { %2719 = vmatmul.mubr.msk.bf16.vlgmr.msra.gmra.mrb[0].mxu0 %vm353_vm1, %v3026_v25 }
  0xf0   : > { %1554 = vmatprep.mubr.bf16.mxu0 %v3044_v0 }
 0x1c1   : > { %v1383_v34 = vpop.f32.mrb[0].mxu1 }
 0x1c2   : > { %v1414_v36 = vmul.f32 %v1405_v30, %v1383_v34  ;;  %v1340_v37 = vpop.f32.mrb[0].mxu0  ;;  %v1385_v38 = vpop.f32.mrb[1].mxu1 }
 0x1c3   : > { %v1412_v40 = vmul.f32 %v1405_v30, %v1340_v37  ;;  %v1415_v41 = vmul.f32 %v1405_v30, %v1385_v38  ;;  %v1342_v42 = vpop.f32.mrb[1].mxu0  ;;  %v1387_v43 = vpop.f32.mrb[2].mxu1  ;;  %v2525_v37 = vld [vmem:[%s3450_s6 + $0x8] sm:$0xff]  ;;  %v2524_v38 = vld [vmem:[%s3450_s6] sm:$0xff] }
 0x1c4   : > { %v1413_v46 = vmul.f32 %v1405_v30, %v1342_v42  ;;  %v1418_v47 = vmul.f32 %v1410_v28, %v1387_v43  ;;  %v1434_v48 = vadd.f32 %v1425_v35, %v1414_v36  ;;  %v1344_v49 = vpop.f32.mrb[2].mxu0  ;;  %v1389_v50 = vpop.f32.mrb[3].mxu1  ;;  %v2506_v36 = vld [vmem:[%s3449_s5] sm:$0xff]  ;;  %v2543_v42 = vunpack.c.h.bf16 %v3123_v1 }
 0x1c5   : > { %v1432_v53 = vadd.f32 %v1425_v35, %v1412_v40  ;;  %v1435_v54 = vadd.f32 %v1425_v35, %v1415_v41  ;;  %v1416_v55 = vmul.f32 %v1410_v28, %v1344_v49  ;;  %v1419_v56 = vmul.f32 %v1410_v28, %v1389_v50  ;;  %v1346_v57 = vpop.f32.mrb[3].mxu0 }
 0x1c6   : > { %v1438_v58 = vadd.f32 %v1430_v52, %v1418_v47  ;;  %v1433_v59 = vadd.f32 %v1425_v35, %v1413_v46  ;;  %v1442_v60 = vmul.f32 0.2, %v1434_v48  ;;  %v1417_v61 = vmul.f32 %v1410_v28, %v1346_v57  ;;  %v2507_v35 = vld [vmem:[%s3449_s5 + $0x8] sm:$0xff] }
 0x1c7   : > { %v1440_v62 = vmul.f32 0.2, %v1432_v53  ;;  %v1443_v63 = vmul.f32 0.2, %v1435_v54  ;;  %v1436_v4 = vadd.f32 %v1430_v52, %v1416_v55  ;;  %v1439_v5 = vadd.f32 %v1430_v52, %v1419_v56 }
 0x1c8   : > { %v1446_v7 = vmul.f32 0.2, %v1438_v58  ;;  %v1441_v8 = vmul.f32 0.2, %v1433_v59  ;;  %v1450_v9 = vmax.f32 %v1434_v48, %v1442_v60  ;;  %v1437_v10 = vadd.f32 %v1430_v52, %v1417_v61  ;;  %v3028_v60 = vld [vmem:[%s3448_s4] sm:$0xff]  }
 0x1c9   : > { %v1448_v11 = vmax.f32 %v1432_v53, %v1440_v62  ;;  %v1451_v12 = vmax.f32 %v1435_v54, %v1443_v63  ;;  %v1444_v13 = vmul.f32 0.2, %v1436_v4  ;;  %v1447_v14 = vmul.f32 0.2, %v1439_v5 }
 0x1ca   : > { %v1454_v15 = vmax.f32 %v1438_v58, %v1446_v7  ;;  %v1449_v16 = vmax.f32 %v1433_v59, %v1441_v8  ;;  %v1445_v17 = vmul.f32 0.2, %v1437_v10  ;;  %v1480_v19 = vmul.f32 %v1469_v39, %v1450_v9  ;;  %v3029_v9 = vld [vmem:[%s3448_s4 + $0x10] sm:$0xff]  }
 0x1cb   : > { %v1452_v20 = vmax.f32 %v1436_v4, %v1444_v13  ;;  %v1455_v21 = vmax.f32 %v1439_v5, %v1447_v14  ;;  %v1478_v23 = vmul.f32 %v1461_v44, %v1448_v11  ;;  %v1481_v26 = vmul.f32 %v1473_v51, %v1451_v12 }
 0x1cc   : > { %v1484_v22 = vmul.f32 %v1469_v39, %v1454_v15  ;;  %v1453_v24 = vmax.f32 %v1437_v10, %v1445_v17  ;;  %v3054_v28 = vmov 0.0   ;;  %v1479_v30 = vmul.f32 %v1465_v18, %v1449_v16  ;;  %v3030_v17 = vld [vmem:[%s3448_s4 + $0x18] sm:$0xff]  }
 0x1cd   : > { %v1482_v25 = vmul.f32 %v1461_v44, %v1452_v20  ;;  %v1485_v27 = vmul.f32 %v1473_v51, %v1455_v21  ;;  %2785 = vmatprep.subr.bf16.mxu1 %v3054_v28  ;;  %2787 = vmatprep.mubr.msk.bf16.mxu1 %vm3055_vm10, %v3054_v28  ;;  %v2544_v39 = vunpack.c.l.bf16 %v3127_v3  ;;  %v2545_v40 = vunpack.c.h.bf16 %v3127_v3 }
 0x1ce   : > { %v3258_v29 = vpack.c.bf16 %v1484_v22, %v1480_v19  ;;  %v1483_v32 = vmul.f32 %v1465_v18, %v1453_v24  ;;  %v2542_v41 = vunpack.c.l.bf16 %v3123_v1  ;;  %v2548_v43 = vunpack.c.l.bf16 %v3133_v6 }
 0x1cf   : > { %v3262_v31 = vpack.c.bf16 %v1482_v25, %v1478_v23  ;;  %v1489_v33 = vpack.c.bf16 %v1485_v27, %v1481_v26  ;;  %v2549_v44 = vunpack.c.h.bf16 %v3133_v6  ;;  %v2547_v46 = vunpack.c.h.bf16 %v3125_v2  ;;  %v3027_v2 = vld [vmem:[%s3448_s4 + $0x8] sm:$0xff]   ;;  %v3031_v25 = vld [vmem:[%s3448_s4 + $0x20] sm:$0xff]  }
 0x1d0   : > { %v3264_v34 = vpack.c.bf16 %v1483_v32, %v1479_v30  ;;  %1508 = vrot.lane.b32.xlu0 %v3258_v29, %s3056_s17  ;;  %v2999_v47 = vpack.i.bf16 %v2545_v40, %v2544_v39  ;;  %v2994_v48 = vpack.i.bf16 %v2543_v42, %v2542_v41  ;;  %v3033_v42 = vld [vmem:[%s3448_s4 + $0x30] sm:$0xff]  }
 0x1d1   : > { %v3009_v49 = vpack.i.bf16 %v2549_v44, %v2548_v43  ;;  %v3004_v3 = vpack.i.bf16 %v2547_v46, %v2546_v45 }
 0x1d2   : > { %1506 = vrot.lane.b32.xlu1 %v3264_v34, %s3056_s17 }
 0x1d4   : > { %1510 = vrot.lane.b32.xlu0 %v1489_v33, %s3056_s17 }
 0x1d6   : > { %1504 = vrot.lane.b32.xlu1 %v3262_v31, %s3056_s17 }
 0x1d8   : > { %1710 = vrot.lane.b32.xlu0 %v3258_v29, %s3057_s18 }
 0x1da   : > { %1708 = vrot.lane.b32.xlu1 %v3264_v34, %s3057_s18 }
 0x1dc   : > { %1712 = vrot.lane.b32.xlu0 %v1489_v33, %s3057_s18 }
 0x1de   : > { %1706 = vrot.lane.b32.xlu1 %v3262_v31, %s3057_s18 }
 0x1e0   : > { %1826 = vrot.lane.b32.xlu0 %v3258_v29, %s3045_s11 }
 0x1e2   : > { %1824 = vrot.lane.b32.xlu1 %v3264_v34, %s3045_s11 }
 0x1e4   : > { %1828 = vrot.lane.b32.xlu0 %v1489_v33, %s3045_s11 }
 0x1e6   : > { %1822 = vrot.lane.b32.xlu1 %v3262_v31, %s3045_s11  ;;  %s3059_s11 = smov 90  }
 0x1e8   : > { %1941 = vrot.lane.b32.xlu0 %v3258_v29, %s3047_s13 }
 0x1ea   : > { %1939 = vrot.lane.b32.xlu1 %v3264_v34, %s3047_s13 }
 0x1ec   : > { %1943 = vrot.lane.b32.xlu0 %v1489_v33, %s3047_s13 }
 0x1ee   : > { %1937 = vrot.lane.b32.xlu1 %v3262_v31, %s3047_s13 }
 0x1f0   : > { %2056 = vrot.lane.b32.xlu0 %v3258_v29, %s3058_s20 }
 0x1f2   : > { %2054 = vrot.lane.b32.xlu1 %v3264_v34, %s3058_s20 }
 0x1f4   : > { %2058 = vrot.lane.b32.xlu0 %v1489_v33, %s3058_s20 }
 0x1f6   : > { %2052 = vrot.lane.b32.xlu1 %v3262_v31, %s3058_s20 }
 0x1f8   : > { %2172 = vrot.lane.b32.xlu0 %v3258_v29, %s3049_s15 }
 0x1fa   : > { %2170 = vrot.lane.b32.xlu1 %v3264_v34, %s3049_s15 }
 0x1fc   : > { %2174 = vrot.lane.b32.xlu0 %v1489_v33, %s3049_s15 }
 0x1fe   : > { %2168 = vrot.lane.b32.xlu1 %v3262_v31, %s3049_s15 }
 0x200   : > { %2287 = vrot.lane.b32.xlu0 %v3258_v29, %s3050_s16 }
 0x202   : > { %2285 = vrot.lane.b32.xlu1 %v3264_v34, %s3050_s16 }
 0x204   : > { %2289 = vrot.lane.b32.xlu0 %v1489_v33, %s3050_s16 }
 0x206   : > { %2283 = vrot.lane.b32.xlu1 %v3262_v31, %s3050_s16  ;;  %s2967_s16 = smul.u32 48, %s3454_s28 }
 0x208   : > { %2402 = vrot.lane.b32.xlu0 %v3258_v29, %s3059_s11  ;;  %s305_s26 = scalar_lea.vmem %s3452_s8, %s2967_s16 }
 0x20a   : > { %2400 = vrot.lane.b32.xlu1 %v3264_v34, %s3059_s11 }
 0x20c   : > { %2404 = vrot.lane.b32.xlu0 %v1489_v33, %s3059_s11 }
 0x20e   : > { %2398 = vrot.lane.b32.xlu1 %v3262_v31, %s3059_s11 }
 0x210   : > { %2515 = vperm.xlu0 %2992, %v2507_v35  }
 0x212   : > { %2510 = vperm.xlu1 %2993, %v2506_v36  }
 0x214   : > { %2533 = vperm.xlu0 %2992, %v2525_v37  }
 0x216   : > { %2528 = vperm.xlu1 %2993, %v2524_v38  }
 0x218   : > { %3000 = vrot.lane.b32.xlu0 %v2999_v47, %s3053_s19 }
 0x21a   : > { %2995 = vrot.lane.b32.xlu1 %v2994_v48, %s3053_s19  ;;  %v3034_v48 = vld [vmem:[%s3448_s4 + $0x38] sm:$0xff]  }
 0x21c   : > { %3010 = vrot.lane.b32.xlu0 %v3009_v49, %s3053_s19 }
 0x21e   : > { %3005 = vrot.lane.b32.xlu1 %v3004_v3, %s3053_s19 }
 0x242   : > { %v1509_v1 = vpop.permute.xlu0 %1508 }
 0x244   : > { %v1507_v50 = vpop.permute.xlu1 %1506 }
 0x245   : > { %v1514_v6 = vsel %vm1512_vm11, %v1507_v50, %v1509_v1 }
 0x246   : > { %v1511_v51 = vpop.permute.xlu0 %1510  ;;  %1522 = vmatprep.subr.bf16.mxu0 %v1514_v6  ;;  %v3035_v6 = vld [vmem:[%s3448_s4 + $0x40] sm:$0xff]  }
 0x247   : > { %v1515_v52 = vsel %vm1512_vm11, %v1509_v1, %v1511_v51 }
 0x248   : > { %2786 = vmatpush3.bf16.msra.mxu1 %v1515_v52  ;;  %v1505_v53 = vpop.permute.xlu1 %1504 }
 0x249   : > { %v1513_v54 = vsel %vm1512_vm11, %v1505_v53, %v1507_v50  ;;  %2791 = vmatprep.subr.bf16.mxu1 %v3054_v28 }
 0x24a   : > { %1523 = vmatpush1.bf16.msra.mxu0 %v1513_v54  ;;  %v1711_v55 = vpop.permute.xlu0 %1710 }
 0x24b   : > { %2788 = vmatmul.mubr.msk.bf16.vlgmr.msra.gmra.mrb[4].mxu1 %vm353_vm1, %v3027_v2  ;;  %1614 = vmatprep.subr.bf16.mxu0 %v3264_v34  ;;  %v3032_v34 = vld [vmem:[%s3448_s4 + $0x28] sm:$0xff]  }
 0x24c   : > { %2792 = vmatpush3.bf16.msra.mxu1 %v3258_v29  ;;  %v1709_v56 = vpop.permute.xlu1 %1708  ;;  %2793 = vmatprep.mubr.msk.bf16.mxu1 %vm3055_vm10, %v3054_v28 }
 0x24d   : > { %2724 = vmatmul.mubr.msk.bf16.vlgmr.msra.gmra.mrb[4].mxu0 %vm353_vm1, %v3027_v2  ;;  %v1716_v57 = vsel %vm1714_vm12, %v1709_v56, %v1711_v55  ;;  %2797 = vmatprep.subr.bf16.mxu1 %v3054_v28 }
 0x24e   : > { %1615 = vmatpush1.bf16.msra.mxu0 %v3262_v31  ;;  %1646 = vmatprep.mubr.bf16.mxu0 %v3044_v0  ;;  %v1713_v59 = vpop.permute.xlu0 %1712 }
 0x24f   : > { %1724 = vmatprep.subr.bf16.mxu0 %v1716_v57  ;;  %v1717_v61 = vsel %vm1714_vm12, %v1711_v55, %v1713_v59 }
 0x250   : > { %v1707_v58 = vpop.permute.xlu1 %1706 }
 0x251   : > { %v1715_v63 = vsel %vm1714_vm12, %v1707_v58, %v1709_v56 }
 0x252   : > { %v1827_v4 = vpop.permute.xlu0 %1826 }
 0x254   : > { %v1825_v62 = vpop.permute.xlu1 %1824 }
 0x255   : > { %v1831_v5 = vsel %vm345_vm0, %v1825_v62, %v1827_v4 }
 0x256   : > { %v1829_v8 = vpop.permute.xlu0 %1828 }
 0x257   : > { %2794 = vmatmul.mubr.msk.bf16.vlgmr.msra.gmra.mrb[4].mxu1 %vm353_vm1, %v3028_v60  ;;  %v1832_v10 = vsel %vm345_vm0, %v1827_v4, %v1829_v8 }
 0x258   : > { %2798 = vmatpush3.bf16.msra.mxu1 %v1717_v61  ;;  %2799 = vmatprep.mubr.msk.bf16.mxu1 %vm3055_vm10, %v3054_v28  ;;  %v1823_v7 = vpop.permute.xlu1 %1822 }
 0x259   : > { %2727 = vmatmul.mubr.msk.bf16.vlgmr.msra.gmra.mrb[4].mxu0 %vm353_vm1, %v3028_v60  ;;  %2803 = vmatprep.subr.bf16.mxu1 %v3054_v28  ;;  %v1830_v12 = vsel %vm345_vm0, %v1823_v7, %v1825_v62 }
 0x25a   : > { %1725 = vmatpush1.bf16.msra.mxu0 %v1715_v63  ;;  %1756 = vmatprep.mubr.bf16.mxu0 %v3044_v0  ;;  %v1942_v13 = vpop.permute.xlu0 %1941 }
 0x25b   : > { %1839 = vmatprep.subr.bf16.mxu0 %v1831_v5 }
 0x25c   : > { %v1940_v11 = vpop.permute.xlu1 %1939 }
 0x25d   : > { %v1946_v14 = vsel %vm569_vm3, %v1940_v11, %v1942_v13 }
 0x25e   : > { %v1944_v16 = vpop.permute.xlu0 %1943 }
 0x25f   : > { %v1947_v18 = vsel %vm569_vm3, %v1942_v13, %v1944_v16 }
 0x260   : > { %v1938_v15 = vpop.permute.xlu1 %1937 }
 0x261   : > { %v1945_v20 = vsel %vm569_vm3, %v1938_v15, %v1940_v11 }
 0x262   : > { %v2057_v21 = vpop.permute.xlu0 %2056 }
 0x263   : > { %2800 = vmatmul.mubr.msk.bf16.vlgmr.msra.gmra.mrb[4].mxu1 %vm353_vm1, %v3029_v9 }
 0x264   : > { %2804 = vmatpush3.bf16.msra.mxu1 %v1832_v10  ;;  %2805 = vmatprep.mubr.msk.bf16.mxu1 %vm3055_vm10, %v3054_v28  ;;  %v2055_v19 = vpop.permute.xlu1 %2054 }
 0x265   : > { %2732 = vmatmul.mubr.msk.bf16.vlgmr.msra.gmra.mrb[4].mxu0 %vm353_vm1, %v3029_v9  ;;  %2809 = vmatprep.subr.bf16.mxu1 %v3054_v28  ;;  %v2062_v22 = vsel %vm2060_vm13, %v2055_v19, %v2057_v21 }
 0x266   : > { %1840 = vmatpush1.bf16.msra.mxu0 %v1830_v12  ;;  %1871 = vmatprep.mubr.bf16.mxu0 %v3044_v0  ;;  %v2059_v24 = vpop.permute.xlu0 %2058 }
 0x267   : > { %1954 = vmatprep.subr.bf16.mxu0 %v1946_v14  ;;  %v2063_v26 = vsel %vm2060_vm13, %v2057_v21, %v2059_v24 }
 0x268   : > { %v2053_v23 = vpop.permute.xlu1 %2052 }
 0x269   : > { %v2061_v29 = vsel %vm2060_vm13, %v2053_v23, %v2055_v19 }
 0x26a   : > { %v2173_v30 = vpop.permute.xlu0 %2172 }
 0x26c   : > { %v2171_v27 = vpop.permute.xlu1 %2170 }
 0x26d   : > { %v2177_v32 = vsel %vm811_vm5, %v2171_v27, %v2173_v30 }
 0x26e   : > { %v2175_v33 = vpop.permute.xlu0 %2174 }
 0x26f   : > { %2806 = vmatmul.mubr.msk.bf16.vlgmr.msra.gmra.mrb[4].mxu1 %vm353_vm1, %v3030_v17  ;;  %v2178_v35 = vsel %vm811_vm5, %v2173_v30, %v2175_v33 }
 0x270   : > { %2810 = vmatpush3.bf16.msra.mxu1 %v1947_v18  ;;  %2811 = vmatprep.mubr.msk.bf16.mxu1 %vm3055_vm10, %v3054_v28  ;;  %v2169_v31 = vpop.permute.xlu1 %2168 }
 0x271   : > { %2737 = vmatmul.mubr.msk.bf16.vlgmr.msra.gmra.mrb[4].mxu0 %vm353_vm1, %v3030_v17  ;;  %2815 = vmatprep.subr.bf16.mxu1 %v3054_v28  ;;  %v2176_v37 = vsel %vm811_vm5, %v2169_v31, %v2171_v27 }
 0x272   : > { %1955 = vmatpush1.bf16.msra.mxu0 %v1945_v20  ;;  %1986 = vmatprep.mubr.bf16.mxu0 %v3044_v0  ;;  %v2288_v38 = vpop.permute.xlu0 %2287 }
 0x273   : > { %2070 = vmatprep.subr.bf16.mxu0 %v2062_v22 }
 0x274   : > { %v2286_v36 = vpop.permute.xlu1 %2285 }
 0x275   : > { %v2292_v39 = vsel %vm932_vm6, %v2286_v36, %v2288_v38 }
 0x276   : > { %v2290_v41 = vpop.permute.xlu0 %2289 }
 0x277   : > { %v2293_v43 = vsel %vm932_vm6, %v2288_v38, %v2290_v41 }
 0x278   : > { %v2284_v40 = vpop.permute.xlu1 %2283 }
 0x279   : > { %v2291_v45 = vsel %vm932_vm6, %v2284_v40, %v2286_v36 }
 0x27a   : > { %v2403_v46 = vpop.permute.xlu0 %2402 }
 0x27b   : > { %2812 = vmatmul.mubr.msk.bf16.vlgmr.msra.gmra.mrb[4].mxu1 %vm353_vm1, %v3031_v25 }
 0x27c   : > { %2816 = vmatpush3.bf16.msra.mxu1 %v2063_v26  ;;  %2817 = vmatprep.mubr.msk.bf16.mxu1 %vm3055_vm10, %v3054_v28  ;;  %v2401_v44 = vpop.permute.xlu1 %2400 }
 0x27d   : > { %2742 = vmatmul.mubr.msk.bf16.vlgmr.msra.gmra.mrb[4].mxu0 %vm353_vm1, %v3031_v25  ;;  %2821 = vmatprep.subr.bf16.mxu1 %v3054_v28  ;;  %v2408_v47 = vsel %vm2406_vm14, %v2401_v44, %v2403_v46 }
 0x27e   : > { %2071 = vmatpush1.bf16.msra.mxu0 %v2061_v29  ;;  %2102 = vmatprep.mubr.bf16.mxu0 %v3044_v0  ;;  %v2405_v49 = vpop.permute.xlu0 %2404 }
 0x27f   : > { %2185 = vmatprep.subr.bf16.mxu0 %v2177_v32  ;;  %v2409_v1 = vsel %vm2406_vm14, %v2403_v46, %v2405_v49 }
 0x280   : > { %v2399_v3 = vpop.permute.xlu1 %2398 }
 0x281   : > { %v2407_v50 = vsel %vm2406_vm14, %v2399_v3, %v2401_v44 }
 0x287   : > { %2818 = vmatmul.mubr.msk.bf16.vlgmr.msra.gmra.mrb[4].mxu1 %vm353_vm1, %v3032_v34 }
 0x288   : > { %2822 = vmatpush3.bf16.msra.mxu1 %v2178_v35  ;;  %2823 = vmatprep.mubr.msk.bf16.mxu1 %vm3055_vm10, %v3054_v28 }
 0x289   : > { %2747 = vmatmul.mubr.msk.bf16.vlgmr.msra.gmra.mrb[4].mxu0 %vm353_vm1, %v3032_v34  ;;  %2827 = vmatprep.subr.bf16.mxu1 %v3054_v28 }
 0x28a   : > { %2186 = vmatpush1.bf16.msra.mxu0 %v2176_v37  ;;  %2217 = vmatprep.mubr.bf16.mxu0 %v3044_v0 }
 0x28b   : > { %2300 = vmatprep.subr.bf16.mxu0 %v2292_v39 }
 0x28f   : > { %v2516_v51 = vpop.permute.xlu0 %2515 }
 0x291   : > { %v2511_v52 = vpop.permute.xlu1 %2510 }
 0x293   : > { %2824 = vmatmul.mubr.msk.bf16.vlgmr.msra.gmra.mrb[4].mxu1 %vm353_vm1, %v3033_v42  ;;  %v2534_v2 = vpop.permute.xlu0 %2533 }
 0x294   : > { %2828 = vmatpush3.bf16.msra.mxu1 %v2293_v43  ;;  %2829 = vmatprep.mubr.msk.bf16.mxu1 %vm3055_vm10, %v3054_v28 }
 0x295   : > { %2752 = vmatmul.mubr.msk.bf16.vlgmr.msra.gmra.mrb[4].mxu0 %vm353_vm1, %v3033_v42  ;;  %2833 = vmatprep.subr.bf16.mxu1 %v3054_v28  ;;  %v2529_v53 = vpop.permute.xlu1 %2528 }
 0x296   : > { %2301 = vmatpush1.bf16.msra.mxu0 %v2291_v45  ;;  %2332 = vmatprep.mubr.bf16.mxu0 %v3044_v0 }
 0x297   : > { %2416 = vmatprep.subr.bf16.mxu0 %v2408_v47 }
 0x299   : > { %v2996_v54 = vpop.permute.xlu1 %2995 }
 0x29a   : > { %v2997_v60 = vunpack.i.l.bf16 %v2996_v54 }
 0x29d   : > { %v3006_v58 = vpop.permute.xlu1 %3005 }
 0x29e   : > { %v3008_v9 = vunpack.i.h.bf16 %v3006_v58  ;;  %v3007_v10 = vunpack.i.l.bf16 %v3006_v58 }
 0x29f   : > { %2830 = vmatmul.mubr.msk.bf16.vlgmr.msra.gmra.mrb[4].mxu1 %vm353_vm1, %v3034_v48 }
 0x2a0   : > { %2834 = vmatpush3.bf16.msra.mxu1 %v2409_v1  ;;  %2835 = vmatprep.mubr.msk.bf16.mxu1 %vm3055_vm10, %v3054_v28  ;;  %v3001_v28 = vpop.permute.xlu0 %3000  ;;  %v2578_v30 = vsel %vm1295_vm9, %v3007_v10, %v3008_v9 }
 0x2a1   : > { %2757 = vmatmul.mubr.msk.bf16.vlgmr.msra.gmra.mrb[4].mxu0 %vm353_vm1, %v3034_v48  ;;  %v3003_v56 = vunpack.i.h.bf16 %v3001_v28  ;;  %v3002_v57 = vunpack.i.l.bf16 %v3001_v28 }
 0x2a2   : > { %2417 = vmatpush1.bf16.msra.mxu0 %v2407_v50  ;;  %2448 = vmatprep.mubr.bf16.mxu0 %v3044_v0  ;;  %v2998_v0 = vunpack.i.h.bf16 %v2996_v54 }
 0x2a3   : > { %v2577_v5 = vsel %vm1295_vm9, %v3002_v57, %v3003_v56 }
 0x2a4   : > { %v3011_v55 = vpop.permute.xlu0 %3010  ;;  %v2575_v16 = vsel %vm1295_vm9, %v2997_v60, %v2998_v0  ;;  %v2576_v19 = vsel %vm1295_vm9, %v2998_v0, %v3002_v57 }
 0x2a5   : > { %v3013_v61 = vunpack.i.h.bf16 %v3011_v55  ;;  %v3012_v62 = vunpack.i.l.bf16 %v3011_v55 }
 0x2a7   : > { %v2580_v17 = vsel %vm1295_vm9, %v3012_v62, %v3013_v61  ;;  %v2579_v29 = vsel %vm1295_vm9, %v3008_v9, %v3012_v62 }
 0x2ab   : > { %2836 = vmatmul.mubr.msk.bf16.vlgmr.msra.gmra.mrb[4].mxu1 %vm353_vm1, %v3035_v6 }
 0x2ad   : > { %2762 = vmatmul.mubr.msk.bf16.vlgmr.msra.gmra.mrb[4].mxu0 %vm353_vm1, %v3035_v6 }
 0x37e   : > { %v2493_v59 = vpop.f32.mrb[4].mxu1 }
 0x37f   : > { %v2520_v63 = vmul.f32 %v2511_v52, %v2493_v59  ;;  %v2837_v4 = vpop.f32.mrb[5].mxu1 }
 0x380   : > { %v2450_v7 = vpop.f32.mrb[4].mxu0  ;;  %v2496_v8 = vpop.f32.mrb[6].mxu1 }
 0x381   : > { %v2538_v11 = vadd.f32 %v2529_v53, %v2520_v63  ;;  %v2518_v12 = vmul.f32 %v2511_v52, %v2450_v7  ;;  %v2523_v13 = vmul.f32 %v2516_v51, %v2496_v8  ;;  %v2838_v14 = vpop.f32.mrb[7].mxu1  ;;  %v2452_v15 = vpop.f32.mrb[5].mxu0 }
 0x382   : > { %v2519_v18 = vmul.f32 %v2511_v52, %v2452_v15  ;;  %v2454_v20 = vpop.f32.mrb[6].mxu0 }
 0x383   : > { %v2589_v21 = vadd.f32 %v2577_v5, %v2538_v11  ;;  %v2536_v22 = vadd.f32 %v2529_v53, %v2518_v12  ;;  %v2541_v23 = vadd.f32 %v2534_v2, %v2523_v13  ;;  %v2521_v24 = vmul.f32 %v2516_v51, %v2454_v20  ;;  %v2456_v25 = vpop.f32.mrb[7].mxu0 }
 0x384   : > { %v2537_v26 = vadd.f32 %v2529_v53, %v2519_v18  ;;  %v2522_v27 = vmul.f32 %v2516_v51, %v2456_v25 }
 0x385   : > { %v2595_v32 = vmul.f32 0.2, %v2589_v21  ;;  %v2587_v31 = vadd.f32 %v2575_v16, %v2536_v22  ;;  %v2592_v33 = vadd.f32 %v2580_v17, %v2541_v23  ;;  %v2539_v34 = vadd.f32 %v2534_v2, %v2521_v24 }
 0x386   : > { %v2588_v35 = vadd.f32 %v2576_v19, %v2537_v26  ;;  %v2540_v36 = vadd.f32 %v2534_v2, %v2522_v27 }
 0x387   : > { %v2601_v37 = vmax.f32 %v2589_v21, %v2595_v32  ;;  %v2593_v38 = vmul.f32 0.2, %v2587_v31  ;;  %v2598_v39 = vmul.f32 0.2, %v2592_v33  ;;  %v2590_v40 = vadd.f32 %v2578_v30, %v2539_v34 }
 0x388   : > { %v2594_v41 = vmul.f32 0.2, %v2588_v35  ;;  %v2591_v42 = vadd.f32 %v2579_v29, %v2540_v36 }
 0x389   : > { %2607 = vst [vmem:[%s305_s26 + $0x10] sm:$0xff] %v2601_v37  ;;  %v2599_v43 = vmax.f32 %v2587_v31, %v2593_v38  ;;  %v2604_v44 = vmax.f32 %v2592_v33, %v2598_v39  ;;  %v2596_v45 = vmul.f32 0.2, %v2590_v40 }
 0x38a   : > { %v2600_v46 = vmax.f32 %v2588_v35, %v2594_v41  ;;  %v2597_v47 = vmul.f32 0.2, %v2591_v42 }
 0x38b   : > { %2605 = vst [vmem:[%s305_s26] sm:$0xff] %v2599_v43  ;;  %2610 = vst [vmem:[%s305_s26 + $0x28] sm:$0xff] %v2604_v44  ;;  %v2602_v48 = vmax.f32 %v2590_v40, %v2596_v45 }
 0x38c   : > { %2606 = vst [vmem:[%s305_s26 + $0x8] sm:$0xff] %v2600_v46  ;;  %v2603_v49 = vmax.f32 %v2591_v42, %v2597_v47 }
 0x38d   : > { %2608 = vst [vmem:[%s305_s26 + $0x18] sm:$0xff] %v2602_v48 }
 0x38e   : > { %2609 = vst [vmem:[%s305_s26 + $0x20] sm:$0xff] %v2603_v49 }
 0x38f PF: > { %s18_s27 = sadd.s32 1, %s3042_s27  }
 0x390   : > { %p15_p4 = scmp.ge.s32.totalorder %s18_s27, 4  }
 0x392   :  { %17 = sbr.rel (!%p15_p4) target bundleno = 1 (0x1), region = 98 }

</bundles_post_ra>
